<compile_context>
chip_gen: v7x
topology: tpu7x:2x2x1
jax: 0.10.0
libtpu: 0.0.40
codegen_flags: <defaults>
</compile_context>

<pallas_src>
import functools

import jax
import jax.numpy as jnp
from jax.experimental import pallas as pl
from jax.experimental.pallas import tpu as pltpu


def _round_up(n, m):
    return ((n + m - 1) // m) * m


def _rnn_seq_kernel(hidden_size, num_classes, seq_len,
                    x_ref, h0_ref, wx_ref, wh_ref, b_ref, slab_ref):
    b_rows, out_pad = h0_ref.shape

    # ---- step-invariant values, hoisted out of the unrolled time loop ----
    col = jax.lax.broadcasted_iota(jnp.int32, (b_rows, out_pad), 1)
    is_class = jnp.logical_and(col >= hidden_size, col < hidden_size + num_classes)
    neg_big = jnp.float32(-1e30)        # finite sentinel (more robust than -inf)
    bias = b_ref[...]                   # (1, OUT_PAD)

    h = h0_ref[...]                     # carried pre-softmax state, (B, OUT_PAD)
    outs = []
    for t in range(seq_len):            # static, fully unrolled
        x = x_ref[t]                    # (B, input_size)

        # Fused i2h + i2o: y[:, :H] = i2h(cat(x, h)), y[:, H:H+C] = i2o(cat(x, h)),
        # remaining lanes are zero padding. Weights are pre-transposed -> no .T.
        y = (jnp.dot(x, wx_ref[...], preferred_element_type=jnp.float32)
             + jnp.dot(h, wh_ref[...], preferred_element_type=jnp.float32)
             + bias)                    # (B, OUT_PAD)

        # Carry pre-softmax y: non-hidden lanes hit zero rows of Wh next step, so
        # the recurrence is identical, but exp/log/max/sum drop off the h->h chain.
        h = y

        # Numerically stable LogSoftmax over the class lanes only (off the
        # recurrent critical path; overlaps the next step's MXU work).
        masked = jnp.where(is_class, y, neg_big)
        m = jnp.max(masked, axis=1, keepdims=True)
        s = jnp.sum(jnp.exp(masked - m), axis=1, keepdims=True)
        lse = m + jnp.log(s)
        outs.append(jnp.where(is_class, y - lse, y))   # [hidden | log_probs | 0]

    # One unmasked, lane-dense full-tile store: (T*B, OUT_PAD) = (8, 128).
    slab_ref[...] = jnp.concatenate(outs, axis=0)


def prepare_rnn_params(w_i2h, b_i2h, w_i2o, b_i2o, input_size):
    """One-time parameter prep, hoisted out of the forward path.

    PyTorch nn.Linear weights are (out_features, in_features) with
    in_features = input_size + hidden_size.  Fuse i2h and i2o along out_features,
    transpose to (in, out), split the contraction into x-part / h-part, and
    zero-pad the out axis to a multiple of 128 lanes.

    IMPORTANT: the padded rows of Wh and padded columns of Wx/Wh/b MUST be exactly
    zero — the kernel carries the full 128-lane pre-softmax state across steps and
    relies on those zeros to keep the class/padding lanes inert in the recurrence.
    (If these weights are ever quantized/cast, re-zero the padding afterwards.)
    """
    hidden_size = w_i2h.shape[0]
    num_classes = w_i2o.shape[0]
    out_pad = _round_up(hidden_size + num_classes, 128)

    w_fused_t = jnp.concatenate([w_i2h, w_i2o], axis=0).T          # (in, H+C)
    w_fused_t = jnp.pad(
        w_fused_t, ((0, 0), (0, out_pad - (hidden_size + num_classes))))
    wx = w_fused_t[:input_size]                                    # (in_size, OUT_PAD)
    wh = jnp.pad(w_fused_t[input_size:],                           # (OUT_PAD, OUT_PAD)
                 ((0, out_pad - hidden_size), (0, 0)))
    b = jnp.concatenate([b_i2h, b_i2o]).reshape(1, -1)
    b = jnp.pad(b, ((0, 0), (0, out_pad - (hidden_size + num_classes))))
    return wx, wh, b, hidden_size, num_classes


@functools.partial(jax.jit, static_argnums=(5, 6))
def rnn_sequence_forward(xs, hidden0, wx, wh, b, hidden_size, num_classes):
    """Runs the RNN forward over a full fixed-length sequence in ONE pallas_call.

    xs: (T, B, input_size), hidden0: (B, hidden_size).
    Returns (log_probs (T, B, num_classes), final_hidden (B, hidden_size)),
    identical to calling the PyTorch module's forward() T times.
    """
    T, B, input_size = xs.shape
    out_pad = wh.shape[0]
    h0_pad = jnp.pad(hidden0, ((0, 0), (0, out_pad - hidden_size)))

    kernel = functools.partial(_rnn_seq_kernel, hidden_size, num_classes, T)

    vmem = pl.BlockSpec(memory_space=pltpu.MemorySpace.VMEM)   # whole-array VMEM block
    slab = pl.pallas_call(
        kernel,
        in_specs=[vmem, vmem, vmem, vmem, vmem],   # xs, h0, Wx, Wh, bias
        out_specs=vmem,
        out_shape=jax.ShapeDtypeStruct((T * B, out_pad), jnp.float32),
    )(xs, h0_pad, wx, wh, b)

    slab = slab.reshape(T, B, out_pad)
    log_probs = slab[:, :, hidden_size:hidden_size + num_classes]
    final_hidden = slab[-1, :, :hidden_size]
    return log_probs, final_hidden


if __name__ == "__main__":
    # Shapes implied by the module (use_char_encoding=False):
    #   embedding_depth=8, max_embedding_length=8 -> input_size = 64
    #   hidden_size = 32; num_classes is a constructor arg (4 here so the
    #   log-softmax is non-trivial); hidden is (1, hidden_size) -> B = 1.
    input_size = 64
    hidden_size = 32
    num_classes = 4
    B = 1
    T = 8  # fixed sequence length

    key = jax.random.PRNGKey(0)
    kx, k1, k2, k3, k4 = jax.random.split(key, 5)

    xs = jax.random.normal(kx, (T, B, input_size), dtype=jnp.float32)
    hidden0 = jnp.zeros((B, hidden_size), dtype=jnp.float32)   # initHidden()

    combined_size = input_size + hidden_size
    bound = 1.0 / float(combined_size) ** 0.5                  # PyTorch Linear init
    w_i2h = jax.random.uniform(k1, (hidden_size, combined_size),
                               minval=-bound, maxval=bound, dtype=jnp.float32)
    b_i2h = jax.random.uniform(k2, (hidden_size,),
                               minval=-bound, maxval=bound, dtype=jnp.float32)
    w_i2o = jax.random.uniform(k3, (num_classes, combined_size),
                               minval=-bound, maxval=bound, dtype=jnp.float32)
    b_i2o = jax.random.uniform(k4, (num_classes,),
                               minval=-bound, maxval=bound, dtype=jnp.float32)

    # One-time parameter prep (hoisted out of the forward path).
    wx, wh, b, H, C = prepare_rnn_params(w_i2h, b_i2h, w_i2o, b_i2o, input_size)

    out, h_final = rnn_sequence_forward(xs, hidden0, wx, wh, b, H, C)
    jax.block_until_ready((out, h_final))

    # Pure-JAX reference: the PyTorch forward applied T times.
    h = hidden0
    ref_outs = []
    for t in range(T):
        combined = jnp.concatenate([xs[t], h], axis=1)
        new_h = combined @ w_i2h.T + b_i2h
        logits = combined @ w_i2o.T + b_i2o
        ref_outs.append(jax.nn.log_softmax(logits, axis=1))
        h = new_h
    ref_out = jnp.stack(ref_outs, axis=0)

    assert jnp.allclose(out, ref_out, atol=2e-5, rtol=1e-5), "output mismatch"
    assert jnp.allclose(h_final, h, atol=2e-5, rtol=1e-5), "hidden mismatch"

    print("KERNEL_OK")
</pallas_src>

<mosaic_0001>
module attributes {stable_mosaic.version = 11 : i64} {
  func.func @_rnn_seq_kernel(%arg0: memref<8x1x64xf32, #tpu.memory_space<vmem>>, %arg1: memref<1x128xf32, #tpu.memory_space<vmem>>, %arg2: memref<64x128xf32, #tpu.memory_space<vmem>>, %arg3: memref<128x128xf32, #tpu.memory_space<vmem>>, %arg4: memref<1x128xf32, #tpu.memory_space<vmem>>, %arg5: memref<8x128xf32, #tpu.memory_space<vmem>>) attributes {dimension_semantics = [], scalar_prefetch = 0 : i64, scratch_operands = 0 : i64, tpu.core_type = #tpu.core_type<tc>} {
    %0 = tpu.iota {dimensions = array<i32: 1>} : vector<1x128xi32>
    %c32_i32 = arith.constant 32 : i32
    %1 = vector.broadcast %c32_i32 : i32 to vector<1x128xi32>
    %2 = arith.cmpi sge, %0, %1 : vector<1x128xi32>
    %c36_i32 = arith.constant 36 : i32
    %3 = vector.broadcast %c36_i32 : i32 to vector<1x128xi32>
    %4 = arith.cmpi slt, %0, %3 : vector<1x128xi32>
    %5 = arith.andi %2, %4 : vector<1x128xi1>
    %c0 = arith.constant 0 : index
    %c0_0 = arith.constant 0 : index
    %6 = vector.load %arg4[%c0, %c0_0] : memref<1x128xf32, #tpu.memory_space<vmem>>, vector<1x128xf32>
    %c0_1 = arith.constant 0 : index
    %c0_2 = arith.constant 0 : index
    %7 = vector.load %arg1[%c0_1, %c0_2] : memref<1x128xf32, #tpu.memory_space<vmem>>, vector<1x128xf32>
    %c0_3 = arith.constant 0 : index
    %c0_4 = arith.constant 0 : index
    %c0_5 = arith.constant 0 : index
    %8 = vector.load %arg0[%c0_3, %c0_4, %c0_5] : memref<8x1x64xf32, #tpu.memory_space<vmem>>, vector<1x1x64xf32>
    %9 = vector.shape_cast %8 : vector<1x1x64xf32> to vector<1x64xf32>
    %c0_6 = arith.constant 0 : index
    %c0_7 = arith.constant 0 : index
    %10 = vector.load %arg2[%c0_6, %c0_7] : memref<64x128xf32, #tpu.memory_space<vmem>>, vector<64x128xf32>
    %cst = arith.constant dense<0.000000e+00> : vector<1x128xf32>
    %11 = tpu.matmul %9, %10, %cst {dimension_numbers = #tpu.dot_dimension_numbers<[1], [0], [0], [1], [0, 0, 1, 1], [], []>} : vector<1x64xf32>, vector<64x128xf32>, vector<1x128xf32> -> vector<1x128xf32>
    %c0_8 = arith.constant 0 : index
    %c0_9 = arith.constant 0 : index
    %12 = vector.load %arg3[%c0_8, %c0_9] : memref<128x128xf32, #tpu.memory_space<vmem>>, vector<128x128xf32>
    %cst_10 = arith.constant dense<0.000000e+00> : vector<1x128xf32>
    %13 = tpu.matmul %7, %12, %cst_10 {dimension_numbers = #tpu.dot_dimension_numbers<[1], [0], [0], [1], [0, 0, 1, 1], [], []>} : vector<1x128xf32>, vector<128x128xf32>, vector<1x128xf32> -> vector<1x128xf32>
    %14 = arith.addf %11, %13 : vector<1x128xf32>
    %15 = arith.addf %14, %6 : vector<1x128xf32>
    %cst_11 = arith.constant -1.000000e+30 : f32
    %16 = vector.broadcast %cst_11 : f32 to vector<1x128xf32>
    %17 = arith.select %5, %15, %16 : vector<1x128xi1>, vector<1x128xf32>
    %cst_12 = arith.constant dense<0xFF800000> : vector<1xf32>
    %18 = vector.multi_reduction <maximumf>, %17, %cst_12 [1] : vector<1x128xf32> to vector<1xf32>
    %19 = vector.shape_cast %18 : vector<1xf32> to vector<1x1xf32>
    %20 = vector.broadcast %19 : vector<1x1xf32> to vector<1x128xf32>
    %21 = arith.subf %17, %20 : vector<1x128xf32>
    %22 = math.exp %21 : vector<1x128xf32>
    %cst_13 = arith.constant dense<0.000000e+00> : vector<1xf32>
    %23 = vector.multi_reduction <add>, %22, %cst_13 [1] : vector<1x128xf32> to vector<1xf32>
    %24 = vector.shape_cast %23 : vector<1xf32> to vector<1x1xf32>
    %25 = math.log %24 : vector<1x1xf32>
    %26 = arith.addf %19, %25 : vector<1x1xf32>
    %27 = vector.broadcast %26 : vector<1x1xf32> to vector<1x128xf32>
    %28 = arith.subf %15, %27 : vector<1x128xf32>
    %29 = arith.select %5, %28, %15 : vector<1x128xi1>, vector<1x128xf32>
    %c1 = arith.constant 1 : index
    %c0_14 = arith.constant 0 : index
    %c0_15 = arith.constant 0 : index
    %30 = vector.load %arg0[%c1, %c0_14, %c0_15] : memref<8x1x64xf32, #tpu.memory_space<vmem>>, vector<1x1x64xf32>
    %31 = vector.shape_cast %30 : vector<1x1x64xf32> to vector<1x64xf32>
    %c0_16 = arith.constant 0 : index
    %c0_17 = arith.constant 0 : index
    %32 = vector.load %arg2[%c0_16, %c0_17] : memref<64x128xf32, #tpu.memory_space<vmem>>, vector<64x128xf32>
    %cst_18 = arith.constant dense<0.000000e+00> : vector<1x128xf32>
    %33 = tpu.matmul %31, %32, %cst_18 {dimension_numbers = #tpu.dot_dimension_numbers<[1], [0], [0], [1], [0, 0, 1, 1], [], []>} : vector<1x64xf32>, vector<64x128xf32>, vector<1x128xf32> -> vector<1x128xf32>
    %c0_19 = arith.constant 0 : index
    %c0_20 = arith.constant 0 : index
    %34 = vector.load %arg3[%c0_19, %c0_20] : memref<128x128xf32, #tpu.memory_space<vmem>>, vector<128x128xf32>
    %cst_21 = arith.constant dense<0.000000e+00> : vector<1x128xf32>
    %35 = tpu.matmul %15, %34, %cst_21 {dimension_numbers = #tpu.dot_dimension_numbers<[1], [0], [0], [1], [0, 0, 1, 1], [], []>} : vector<1x128xf32>, vector<128x128xf32>, vector<1x128xf32> -> vector<1x128xf32>
    %36 = arith.addf %33, %35 : vector<1x128xf32>
    %37 = arith.addf %36, %6 : vector<1x128xf32>
    %cst_22 = arith.constant -1.000000e+30 : f32
    %38 = vector.broadcast %cst_22 : f32 to vector<1x128xf32>
    %39 = arith.select %5, %37, %38 : vector<1x128xi1>, vector<1x128xf32>
    %cst_23 = arith.constant dense<0xFF800000> : vector<1xf32>
    %40 = vector.multi_reduction <maximumf>, %39, %cst_23 [1] : vector<1x128xf32> to vector<1xf32>
    %41 = vector.shape_cast %40 : vector<1xf32> to vector<1x1xf32>
    %42 = vector.broadcast %41 : vector<1x1xf32> to vector<1x128xf32>
    %43 = arith.subf %39, %42 : vector<1x128xf32>
    %44 = math.exp %43 : vector<1x128xf32>
    %cst_24 = arith.constant dense<0.000000e+00> : vector<1xf32>
    %45 = vector.multi_reduction <add>, %44, %cst_24 [1] : vector<1x128xf32> to vector<1xf32>
    %46 = vector.shape_cast %45 : vector<1xf32> to vector<1x1xf32>
    %47 = math.log %46 : vector<1x1xf32>
    %48 = arith.addf %41, %47 : vector<1x1xf32>
    %49 = vector.broadcast %48 : vector<1x1xf32> to vector<1x128xf32>
    %50 = arith.subf %37, %49 : vector<1x128xf32>
    %51 = arith.select %5, %50, %37 : vector<1x128xi1>, vector<1x128xf32>
    %c2 = arith.constant 2 : index
    %c0_25 = arith.constant 0 : index
    %c0_26 = arith.constant 0 : index
    %52 = vector.load %arg0[%c2, %c0_25, %c0_26] : memref<8x1x64xf32, #tpu.memory_space<vmem>>, vector<1x1x64xf32>
    %53 = vector.shape_cast %52 : vector<1x1x64xf32> to vector<1x64xf32>
    %c0_27 = arith.constant 0 : index
    %c0_28 = arith.constant 0 : index
    %54 = vector.load %arg2[%c0_27, %c0_28] : memref<64x128xf32, #tpu.memory_space<vmem>>, vector<64x128xf32>
    %cst_29 = arith.constant dense<0.000000e+00> : vector<1x128xf32>
    %55 = tpu.matmul %53, %54, %cst_29 {dimension_numbers = #tpu.dot_dimension_numbers<[1], [0], [0], [1], [0, 0, 1, 1], [], []>} : vector<1x64xf32>, vector<64x128xf32>, vector<1x128xf32> -> vector<1x128xf32>
    %c0_30 = arith.constant 0 : index
    %c0_31 = arith.constant 0 : index
    %56 = vector.load %arg3[%c0_30, %c0_31] : memref<128x128xf32, #tpu.memory_space<vmem>>, vector<128x128xf32>
    %cst_32 = arith.constant dense<0.000000e+00> : vector<1x128xf32>
    %57 = tpu.matmul %37, %56, %cst_32 {dimension_numbers = #tpu.dot_dimension_numbers<[1], [0], [0], [1], [0, 0, 1, 1], [], []>} : vector<1x128xf32>, vector<128x128xf32>, vector<1x128xf32> -> vector<1x128xf32>
    %58 = arith.addf %55, %57 : vector<1x128xf32>
    %59 = arith.addf %58, %6 : vector<1x128xf32>
    %cst_33 = arith.constant -1.000000e+30 : f32
    %60 = vector.broadcast %cst_33 : f32 to vector<1x128xf32>
    %61 = arith.select %5, %59, %60 : vector<1x128xi1>, vector<1x128xf32>
    %cst_34 = arith.constant dense<0xFF800000> : vector<1xf32>
    %62 = vector.multi_reduction <maximumf>, %61, %cst_34 [1] : vector<1x128xf32> to vector<1xf32>
    %63 = vector.shape_cast %62 : vector<1xf32> to vector<1x1xf32>
    %64 = vector.broadcast %63 : vector<1x1xf32> to vector<1x128xf32>
    %65 = arith.subf %61, %64 : vector<1x128xf32>
    %66 = math.exp %65 : vector<1x128xf32>
    %cst_35 = arith.constant dense<0.000000e+00> : vector<1xf32>
    %67 = vector.multi_reduction <add>, %66, %cst_35 [1] : vector<1x128xf32> to vector<1xf32>
    %68 = vector.shape_cast %67 : vector<1xf32> to vector<1x1xf32>
    %69 = math.log %68 : vector<1x1xf32>
    %70 = arith.addf %63, %69 : vector<1x1xf32>
    %71 = vector.broadcast %70 : vector<1x1xf32> to vector<1x128xf32>
    %72 = arith.subf %59, %71 : vector<1x128xf32>
    %73 = arith.select %5, %72, %59 : vector<1x128xi1>, vector<1x128xf32>
    %c3 = arith.constant 3 : index
    %c0_36 = arith.constant 0 : index
    %c0_37 = arith.constant 0 : index
    %74 = vector.load %arg0[%c3, %c0_36, %c0_37] : memref<8x1x64xf32, #tpu.memory_space<vmem>>, vector<1x1x64xf32>
    %75 = vector.shape_cast %74 : vector<1x1x64xf32> to vector<1x64xf32>
    %c0_38 = arith.constant 0 : index
    %c0_39 = arith.constant 0 : index
    %76 = vector.load %arg2[%c0_38, %c0_39] : memref<64x128xf32, #tpu.memory_space<vmem>>, vector<64x128xf32>
    %cst_40 = arith.constant dense<0.000000e+00> : vector<1x128xf32>
    %77 = tpu.matmul %75, %76, %cst_40 {dimension_numbers = #tpu.dot_dimension_numbers<[1], [0], [0], [1], [0, 0, 1, 1], [], []>} : vector<1x64xf32>, vector<64x128xf32>, vector<1x128xf32> -> vector<1x128xf32>
    %c0_41 = arith.constant 0 : index
    %c0_42 = arith.constant 0 : index
    %78 = vector.load %arg3[%c0_41, %c0_42] : memref<128x128xf32, #tpu.memory_space<vmem>>, vector<128x128xf32>
    %cst_43 = arith.constant dense<0.000000e+00> : vector<1x128xf32>
    %79 = tpu.matmul %59, %78, %cst_43 {dimension_numbers = #tpu.dot_dimension_numbers<[1], [0], [0], [1], [0, 0, 1, 1], [], []>} : vector<1x128xf32>, vector<128x128xf32>, vector<1x128xf32> -> vector<1x128xf32>
    %80 = arith.addf %77, %79 : vector<1x128xf32>
    %81 = arith.addf %80, %6 : vector<1x128xf32>
    %cst_44 = arith.constant -1.000000e+30 : f32
    %82 = vector.broadcast %cst_44 : f32 to vector<1x128xf32>
    %83 = arith.select %5, %81, %82 : vector<1x128xi1>, vector<1x128xf32>
    %cst_45 = arith.constant dense<0xFF800000> : vector<1xf32>
    %84 = vector.multi_reduction <maximumf>, %83, %cst_45 [1] : vector<1x128xf32> to vector<1xf32>
    %85 = vector.shape_cast %84 : vector<1xf32> to vector<1x1xf32>
    %86 = vector.broadcast %85 : vector<1x1xf32> to vector<1x128xf32>
    %87 = arith.subf %83, %86 : vector<1x128xf32>
    %88 = math.exp %87 : vector<1x128xf32>
    %cst_46 = arith.constant dense<0.000000e+00> : vector<1xf32>
    %89 = vector.multi_reduction <add>, %88, %cst_46 [1] : vector<1x128xf32> to vector<1xf32>
    %90 = vector.shape_cast %89 : vector<1xf32> to vector<1x1xf32>
    %91 = math.log %90 : vector<1x1xf32>
    %92 = arith.addf %85, %91 : vector<1x1xf32>
    %93 = vector.broadcast %92 : vector<1x1xf32> to vector<1x128xf32>
    %94 = arith.subf %81, %93 : vector<1x128xf32>
    %95 = arith.select %5, %94, %81 : vector<1x128xi1>, vector<1x128xf32>
    %c4 = arith.constant 4 : index
    %c0_47 = arith.constant 0 : index
    %c0_48 = arith.constant 0 : index
    %96 = vector.load %arg0[%c4, %c0_47, %c0_48] : memref<8x1x64xf32, #tpu.memory_space<vmem>>, vector<1x1x64xf32>
    %97 = vector.shape_cast %96 : vector<1x1x64xf32> to vector<1x64xf32>
    %c0_49 = arith.constant 0 : index
    %c0_50 = arith.constant 0 : index
    %98 = vector.load %arg2[%c0_49, %c0_50] : memref<64x128xf32, #tpu.memory_space<vmem>>, vector<64x128xf32>
    %cst_51 = arith.constant dense<0.000000e+00> : vector<1x128xf32>
    %99 = tpu.matmul %97, %98, %cst_51 {dimension_numbers = #tpu.dot_dimension_numbers<[1], [0], [0], [1], [0, 0, 1, 1], [], []>} : vector<1x64xf32>, vector<64x128xf32>, vector<1x128xf32> -> vector<1x128xf32>
    %c0_52 = arith.constant 0 : index
    %c0_53 = arith.constant 0 : index
    %100 = vector.load %arg3[%c0_52, %c0_53] : memref<128x128xf32, #tpu.memory_space<vmem>>, vector<128x128xf32>
    %cst_54 = arith.constant dense<0.000000e+00> : vector<1x128xf32>
    %101 = tpu.matmul %81, %100, %cst_54 {dimension_numbers = #tpu.dot_dimension_numbers<[1], [0], [0], [1], [0, 0, 1, 1], [], []>} : vector<1x128xf32>, vector<128x128xf32>, vector<1x128xf32> -> vector<1x128xf32>
    %102 = arith.addf %99, %101 : vector<1x128xf32>
    %103 = arith.addf %102, %6 : vector<1x128xf32>
    %cst_55 = arith.constant -1.000000e+30 : f32
    %104 = vector.broadcast %cst_55 : f32 to vector<1x128xf32>
    %105 = arith.select %5, %103, %104 : vector<1x128xi1>, vector<1x128xf32>
    %cst_56 = arith.constant dense<0xFF800000> : vector<1xf32>
    %106 = vector.multi_reduction <maximumf>, %105, %cst_56 [1] : vector<1x128xf32> to vector<1xf32>
    %107 = vector.shape_cast %106 : vector<1xf32> to vector<1x1xf32>
    %108 = vector.broadcast %107 : vector<1x1xf32> to vector<1x128xf32>
    %109 = arith.subf %105, %108 : vector<1x128xf32>
    %110 = math.exp %109 : vector<1x128xf32>
    %cst_57 = arith.constant dense<0.000000e+00> : vector<1xf32>
    %111 = vector.multi_reduction <add>, %110, %cst_57 [1] : vector<1x128xf32> to vector<1xf32>
    %112 = vector.shape_cast %111 : vector<1xf32> to vector<1x1xf32>
    %113 = math.log %112 : vector<1x1xf32>
    %114 = arith.addf %107, %113 : vector<1x1xf32>
    %115 = vector.broadcast %114 : vector<1x1xf32> to vector<1x128xf32>
    %116 = arith.subf %103, %115 : vector<1x128xf32>
    %117 = arith.select %5, %116, %103 : vector<1x128xi1>, vector<1x128xf32>
    %c5 = arith.constant 5 : index
    %c0_58 = arith.constant 0 : index
    %c0_59 = arith.constant 0 : index
    %118 = vector.load %arg0[%c5, %c0_58, %c0_59] : memref<8x1x64xf32, #tpu.memory_space<vmem>>, vector<1x1x64xf32>
    %119 = vector.shape_cast %118 : vector<1x1x64xf32> to vector<1x64xf32>
    %c0_60 = arith.constant 0 : index
    %c0_61 = arith.constant 0 : index
    %120 = vector.load %arg2[%c0_60, %c0_61] : memref<64x128xf32, #tpu.memory_space<vmem>>, vector<64x128xf32>
    %cst_62 = arith.constant dense<0.000000e+00> : vector<1x128xf32>
    %121 = tpu.matmul %119, %120, %cst_62 {dimension_numbers = #tpu.dot_dimension_numbers<[1], [0], [0], [1], [0, 0, 1, 1], [], []>} : vector<1x64xf32>, vector<64x128xf32>, vector<1x128xf32> -> vector<1x128xf32>
    %c0_63 = arith.constant 0 : index
    %c0_64 = arith.constant 0 : index
    %122 = vector.load %arg3[%c0_63, %c0_64] : memref<128x128xf32, #tpu.memory_space<vmem>>, vector<128x128xf32>
    %cst_65 = arith.constant dense<0.000000e+00> : vector<1x128xf32>
    %123 = tpu.matmul %103, %122, %cst_65 {dimension_numbers = #tpu.dot_dimension_numbers<[1], [0], [0], [1], [0, 0, 1, 1], [], []>} : vector<1x128xf32>, vector<128x128xf32>, vector<1x128xf32> -> vector<1x128xf32>
    %124 = arith.addf %121, %123 : vector<1x128xf32>
    %125 = arith.addf %124, %6 : vector<1x128xf32>
    %cst_66 = arith.constant -1.000000e+30 : f32
    %126 = vector.broadcast %cst_66 : f32 to vector<1x128xf32>
    %127 = arith.select %5, %125, %126 : vector<1x128xi1>, vector<1x128xf32>
    %cst_67 = arith.constant dense<0xFF800000> : vector<1xf32>
    %128 = vector.multi_reduction <maximumf>, %127, %cst_67 [1] : vector<1x128xf32> to vector<1xf32>
    %129 = vector.shape_cast %128 : vector<1xf32> to vector<1x1xf32>
    %130 = vector.broadcast %129 : vector<1x1xf32> to vector<1x128xf32>
    %131 = arith.subf %127, %130 : vector<1x128xf32>
    %132 = math.exp %131 : vector<1x128xf32>
    %cst_68 = arith.constant dense<0.000000e+00> : vector<1xf32>
    %133 = vector.multi_reduction <add>, %132, %cst_68 [1] : vector<1x128xf32> to vector<1xf32>
    %134 = vector.shape_cast %133 : vector<1xf32> to vector<1x1xf32>
    %135 = math.log %134 : vector<1x1xf32>
    %136 = arith.addf %129, %135 : vector<1x1xf32>
    %137 = vector.broadcast %136 : vector<1x1xf32> to vector<1x128xf32>
    %138 = arith.subf %125, %137 : vector<1x128xf32>
    %139 = arith.select %5, %138, %125 : vector<1x128xi1>, vector<1x128xf32>
    %c6 = arith.constant 6 : index
    %c0_69 = arith.constant 0 : index
    %c0_70 = arith.constant 0 : index
    %140 = vector.load %arg0[%c6, %c0_69, %c0_70] : memref<8x1x64xf32, #tpu.memory_space<vmem>>, vector<1x1x64xf32>
    %141 = vector.shape_cast %140 : vector<1x1x64xf32> to vector<1x64xf32>
    %c0_71 = arith.constant 0 : index
    %c0_72 = arith.constant 0 : index
    %142 = vector.load %arg2[%c0_71, %c0_72] : memref<64x128xf32, #tpu.memory_space<vmem>>, vector<64x128xf32>
    %cst_73 = arith.constant dense<0.000000e+00> : vector<1x128xf32>
    %143 = tpu.matmul %141, %142, %cst_73 {dimension_numbers = #tpu.dot_dimension_numbers<[1], [0], [0], [1], [0, 0, 1, 1], [], []>} : vector<1x64xf32>, vector<64x128xf32>, vector<1x128xf32> -> vector<1x128xf32>
    %c0_74 = arith.constant 0 : index
    %c0_75 = arith.constant 0 : index
    %144 = vector.load %arg3[%c0_74, %c0_75] : memref<128x128xf32, #tpu.memory_space<vmem>>, vector<128x128xf32>
    %cst_76 = arith.constant dense<0.000000e+00> : vector<1x128xf32>
    %145 = tpu.matmul %125, %144, %cst_76 {dimension_numbers = #tpu.dot_dimension_numbers<[1], [0], [0], [1], [0, 0, 1, 1], [], []>} : vector<1x128xf32>, vector<128x128xf32>, vector<1x128xf32> -> vector<1x128xf32>
    %146 = arith.addf %143, %145 : vector<1x128xf32>
    %147 = arith.addf %146, %6 : vector<1x128xf32>
    %cst_77 = arith.constant -1.000000e+30 : f32
    %148 = vector.broadcast %cst_77 : f32 to vector<1x128xf32>
    %149 = arith.select %5, %147, %148 : vector<1x128xi1>, vector<1x128xf32>
    %cst_78 = arith.constant dense<0xFF800000> : vector<1xf32>
    %150 = vector.multi_reduction <maximumf>, %149, %cst_78 [1] : vector<1x128xf32> to vector<1xf32>
    %151 = vector.shape_cast %150 : vector<1xf32> to vector<1x1xf32>
    %152 = vector.broadcast %151 : vector<1x1xf32> to vector<1x128xf32>
    %153 = arith.subf %149, %152 : vector<1x128xf32>
    %154 = math.exp %153 : vector<1x128xf32>
    %cst_79 = arith.constant dense<0.000000e+00> : vector<1xf32>
    %155 = vector.multi_reduction <add>, %154, %cst_79 [1] : vector<1x128xf32> to vector<1xf32>
    %156 = vector.shape_cast %155 : vector<1xf32> to vector<1x1xf32>
    %157 = math.log %156 : vector<1x1xf32>
    %158 = arith.addf %151, %157 : vector<1x1xf32>
    %159 = vector.broadcast %158 : vector<1x1xf32> to vector<1x128xf32>
    %160 = arith.subf %147, %159 : vector<1x128xf32>
    %161 = arith.select %5, %160, %147 : vector<1x128xi1>, vector<1x128xf32>
    %c7 = arith.constant 7 : index
    %c0_80 = arith.constant 0 : index
    %c0_81 = arith.constant 0 : index
    %162 = vector.load %arg0[%c7, %c0_80, %c0_81] : memref<8x1x64xf32, #tpu.memory_space<vmem>>, vector<1x1x64xf32>
    %163 = vector.shape_cast %162 : vector<1x1x64xf32> to vector<1x64xf32>
    %c0_82 = arith.constant 0 : index
    %c0_83 = arith.constant 0 : index
    %164 = vector.load %arg2[%c0_82, %c0_83] : memref<64x128xf32, #tpu.memory_space<vmem>>, vector<64x128xf32>
    %cst_84 = arith.constant dense<0.000000e+00> : vector<1x128xf32>
    %165 = tpu.matmul %163, %164, %cst_84 {dimension_numbers = #tpu.dot_dimension_numbers<[1], [0], [0], [1], [0, 0, 1, 1], [], []>} : vector<1x64xf32>, vector<64x128xf32>, vector<1x128xf32> -> vector<1x128xf32>
    %c0_85 = arith.constant 0 : index
    %c0_86 = arith.constant 0 : index
    %166 = vector.load %arg3[%c0_85, %c0_86] : memref<128x128xf32, #tpu.memory_space<vmem>>, vector<128x128xf32>
    %cst_87 = arith.constant dense<0.000000e+00> : vector<1x128xf32>
    %167 = tpu.matmul %147, %166, %cst_87 {dimension_numbers = #tpu.dot_dimension_numbers<[1], [0], [0], [1], [0, 0, 1, 1], [], []>} : vector<1x128xf32>, vector<128x128xf32>, vector<1x128xf32> -> vector<1x128xf32>
    %168 = arith.addf %165, %167 : vector<1x128xf32>
    %169 = arith.addf %168, %6 : vector<1x128xf32>
    %cst_88 = arith.constant -1.000000e+30 : f32
    %170 = vector.broadcast %cst_88 : f32 to vector<1x128xf32>
    %171 = arith.select %5, %169, %170 : vector<1x128xi1>, vector<1x128xf32>
    %cst_89 = arith.constant dense<0xFF800000> : vector<1xf32>
    %172 = vector.multi_reduction <maximumf>, %171, %cst_89 [1] : vector<1x128xf32> to vector<1xf32>
    %173 = vector.shape_cast %172 : vector<1xf32> to vector<1x1xf32>
    %174 = vector.broadcast %173 : vector<1x1xf32> to vector<1x128xf32>
    %175 = arith.subf %171, %174 : vector<1x128xf32>
    %176 = math.exp %175 : vector<1x128xf32>
    %cst_90 = arith.constant dense<0.000000e+00> : vector<1xf32>
    %177 = vector.multi_reduction <add>, %176, %cst_90 [1] : vector<1x128xf32> to vector<1xf32>
    %178 = vector.shape_cast %177 : vector<1xf32> to vector<1x1xf32>
    %179 = math.log %178 : vector<1x1xf32>
    %180 = arith.addf %173, %179 : vector<1x1xf32>
    %181 = vector.broadcast %180 : vector<1x1xf32> to vector<1x128xf32>
    %182 = arith.subf %169, %181 : vector<1x128xf32>
    %183 = arith.select %5, %182, %169 : vector<1x128xi1>, vector<1x128xf32>
    %184 = tpu.concatenate %29, %51, %73, %95, %117, %139, %161, %183 in 0 : vector<1x128xf32>, vector<1x128xf32>, vector<1x128xf32>, vector<1x128xf32>, vector<1x128xf32>, vector<1x128xf32>, vector<1x128xf32>, vector<1x128xf32> -> vector<8x128xf32>
    %c0_91 = arith.constant 0 : index
    %c0_92 = arith.constant 0 : index
    %185 = vector.load %arg5[%c0_91, %c0_92] : memref<8x128xf32, #tpu.memory_space<vmem>>, vector<8x128xf32>
    tpu.vector_store %arg5[%c0_91, %c0_92], %184 {strides = array<i32>} : memref<8x128xf32, #tpu.memory_space<vmem>>, vector<8x128xf32>,
    return
  }
}

</mosaic_0001>

<bundles_post_ra>
// kernel: rnn_sequence_forward.1
= control target key start
LH: loop header
LB: loop body
LE: loop exit
PB: predicated region body
PF: predicated region fallthrough
CT: control target
= control target key end

     0   :  { %10 = vsyncpa [#allocation3], 0  ;;  %s2979_s0 = inlined_call_operand.hbm [shape: f32[8,1,64], index: 0, kind: input, shape index: {}]   ;;  %s2980_s1 = inlined_call_operand.vmem [shape: f32[1,128], index: 1, kind: input, shape index: {}]   ;;  %s2981_s2 = inlined_call_operand.hbm [shape: f32[64,128], index: 2, kind: input, shape index: {}]   ;;  %s2982_s3 = inlined_call_operand.hbm [shape: f32[128,128], index: 3, kind: input, shape index: {}]   ;;  %s2983_s4 = inlined_call_operand.vmem [shape: f32[1,128], index: 4, kind: input, shape index: {}]   ;;  %s2984_s5 = inlined_call_operand.vmem [shape: f32[8,128], index: 5, kind: output, shape index: {}]  }
   0x1   :  { %11 = vsyncpa [#allocation5], 0  ;;  %s2470_s18 = smov [#allocation4]   ;;  %s2400_s22 = scalar_lea.hbm %s2981_s2, 1024 }
   0x2   :  { %s31_s19 = sshll.u32 %s2470_s18, 4  ;;  %p2401_p0 = scmp.ne.s32.totalorder %s2981_s2, %s2400_s22  ;;  %s32_s19 = int_to_ptr.vmem [resolvable:$true] %s31_s19 }
   0x3   :  { %p2404_p1 = scmp.lt.u32.totalorder %s2400_s22, %s2981_s2 }
   0x5   :  { %p2406_p2 = pnand %p2404_p1, %p2401_p0 }
   0x7   :  { %2409 = shalt.err (!%p2406_p2)
}
   0x8   :  { %s2410_s27 = scalar_lea.vmem %s32_s19, 1024  ;;  %p2415_p4 = scmp.lt.s32.totalorder %s32_s19, %s32_s19 }
   0x9   :  { %p2411_p3 = scmp.ne.s32.totalorder %s32_s19, %s2410_s27  ;;  %p2416_p5 = scmp.lt.s32.totalorder %s2410_s27, %s2410_s27 }
   0xb   :  { %p2417_p6 = por %p2416_p5, %p2415_p4 }
   0xd   :  { %p2418_p7 = pnand %p2417_p6, %p2411_p3 }
   0xf   :  { %2421 = shalt.err (!%p2418_p7)
}
  0x10   :  { %s2471_s28 = smov 128   ;;  %s2472_s29 = smov 8  }
  0x11   :  { %37 = dma.hbm_to_vmem [thread:$0]  %s2981_s2, 1024, %s32_s19, [#allocation5], %s2471_s28, %s2471_s28, %s2472_s29  }
  0x12   :  { %s2473_s7 = smov [#allocation2]   ;;  %s2422_s11 = scalar_lea.hbm %s2979_s0, 128 }
  0x13   :  { %s17_s8 = sshll.u32 %s2473_s7, 4  ;;  %p2423_p8 = scmp.ne.s32.totalorder %s2979_s0, %s2422_s11  ;;  %s18_s8 = int_to_ptr.vmem [resolvable:$true] %s17_s8 }
  0x14   :  { %p2426_p9 = scmp.lt.u32.totalorder %s2422_s11, %s2979_s0 }
  0x16   :  { %p2428_p10 = pnand %p2426_p9, %p2423_p8 }
  0x18   :  { %2431 = shalt.err (!%p2428_p10)
}
  0x19   :  { %s2432_s16 = scalar_lea.vmem %s18_s8, 128  ;;  %p2437_p12 = scmp.lt.s32.totalorder %s18_s8, %s18_s8 }
  0x1a   :  { %p2433_p11 = scmp.ne.s32.totalorder %s18_s8, %s2432_s16  ;;  %p2438_p13 = scmp.lt.s32.totalorder %s2432_s16, %s2432_s16 }
  0x1c   :  { %p2439_p0 = por %p2438_p13, %p2437_p12 }
  0x1e   :  { %p2440_p1 = pnand %p2439_p0, %p2433_p11 }
  0x20   :  { %2443 = shalt.err (!%p2440_p1)
}
  0x21   :  { %s2474_s2 = smov 16   ;;  %s2475_s17 = smov 1  }
  0x22   :  { %23 = dma.hbm_to_vmem [thread:$0]  %s2979_s0, 128, %s18_s8, [#allocation3], %s2474_s2, %s2474_s2, %s2475_s17  }
  0x23   :  { %s2476_s20 = smov [#allocation6]   ;;  %s2444_s24 = scalar_lea.hbm %s2982_s3, 2048 }
  0x24   :  { %s43_s21 = sshll.u32 %s2476_s20, 4  ;;  %p2445_p2 = scmp.ne.s32.totalorder %s2982_s3, %s2444_s24  ;;  %s44_s21 = int_to_ptr.vmem [resolvable:$true] %s43_s21 }
  0x25   :  { %p2448_p3 = scmp.lt.u32.totalorder %s2444_s24, %s2982_s3 }
  0x27   :  { %p2450_p4 = pnand %p2448_p3, %p2445_p2 }
  0x29   :  { %2453 = shalt.err (!%p2450_p4)
}
  0x2a   :  { %s2454_s6 = scalar_lea.vmem %s44_s21, 2048  ;;  %p2459_p6 = scmp.lt.s32.totalorder %s44_s21, %s44_s21 }
  0x2b   :  { %p2455_p5 = scmp.ne.s32.totalorder %s44_s21, %s2454_s6  ;;  %p2460_p7 = scmp.lt.s32.totalorder %s2454_s6, %s2454_s6 }
  0x2d   :  { %p2461_p8 = por %p2460_p7, %p2459_p6 }
  0x2f   :  { %p2462_p9 = pnand %p2461_p8, %p2455_p5 }
  0x31   :  { %2465 = shalt.err (!%p2462_p9)
}
  0x32   :  { %49 = dma.hbm_to_vmem [thread:$0]  %s2982_s3, 2048, %s44_s21, [#allocation5], %s2471_s28, %s2471_s28, %s2472_s29  }
  0x33   :  { %2466 = dma.done.wait [#allocation3], 128  }
  0x34   :  { %2467 = vsyncadd [#allocation3], 4294967168 }
  0x35   :  { %2468 = dma.done.wait [#allocation5], 3072  }
  0x36   :  { %2469 = vsyncadd [#allocation5], 4294964224  ;;  %v2477_v0 = vmov 0.0|0.0   ;;  %vm2478_vm0 = vmmov 0   ;;  %v2479_v1 = vmov 0.0   ;;  %v77_v2 = vld [vmem:[#allocation6] sm:$0xff]  ;;  %v61_v43 = vlaneseq }
  0x37   :  { %2070 = vmatprep.subr.bf16.mxu0 %v2477_v0  ;;  %2094 = vmatprep.subr.bf16.mxu1 %v2477_v0  ;;  %v78_v3 = vld [vmem:[#allocation6 + $0x8] sm:$0xff]  ;;  %v79_v4 = vld [vmem:[#allocation6 + $0x10] sm:$0xff]  ;;  %v80_v6 = vld [vmem:[#allocation6 + $0x18] sm:$0xff]  ;;  %vm163_vm1 = vcmask 523264   ;;  %vm239_vm5 = vcmask 1040384   ;;  %vm1403_vm6 = vcmask 1041408  }
  0x38   :  { %1689 = vmatprep.mubr.msk.f32.mxu1 %vm2478_vm0, %v2479_v1  ;;  %1670 = vmatprep.mubr.msk.f32.mxu0 %vm2478_vm0, %v2479_v1  ;;  %v2558_v5 = vpack.c.bf16 %v78_v3, %v77_v2  ;;  %v69_v7 = vld [vmem:[#allocation4] sm:$0xff]  ;;  %v2561_v8 = vpack.c.bf16 %v80_v6, %v79_v4  ;;  %v70_v10 = vld [vmem:[#allocation4 + $0x8] sm:$0xff]  ;;  %v71_v13 = vld [vmem:[#allocation4 + $0x10] sm:$0xff]  ;;  %v62_v44 = vand.u32 127, %v61_v43  ;;  %vm1405_vm7 = vcmask 1042432  }
  0x39   :  { %v81_v9 = vld [vmem:[#allocation6 + $0x20] sm:$0xff]  ;;  %v82_v11 = vld [vmem:[#allocation6 + $0x28] sm:$0xff]  ;;  %v2564_v12 = vpack.c.bf16 %v70_v10, %v69_v7  ;;  %v72_v14 = vld [vmem:[#allocation4 + $0x18] sm:$0xff]  ;;  %vm1407_vm8 = vcmask 1043456   ;;  %vm1409_vm9 = vcmask 1044480   ;;  %vm1411_vm10 = vcmask 1045504  }
  0x3a   :  { %2072 = vmatpush3.bf16.msra.mxu0 %v2558_v5  ;;  %v2567_v15 = vpack.c.bf16 %v72_v14, %v71_v13  ;;  %v2570_v16 = vpack.c.bf16 %v82_v11, %v81_v9  ;;  %v73_v17 = vld [vmem:[#allocation4 + $0x20] sm:$0xff]  ;;  %v74_v18 = vld [vmem:[#allocation4 + $0x28] sm:$0xff]  ;;  %v83_v19 = vld [vmem:[#allocation6 + $0x30] sm:$0xff]  ;;  %vm63_vm2 = vcmp.ge.s32.totalorder %v62_v44, 32  ;;  %vm64_vm3 = vcmp.lt.s32.totalorder %v62_v44, 36 }
  0x3b   :  { %2073 = vmatprep.subr.bf16.mxu0 %v2477_v0  ;;  %2096 = vmatpush3.bf16.msra.mxu1 %v2564_v12  ;;  %v84_v20 = vld [vmem:[#allocation6 + $0x38] sm:$0xff]  ;;  %v2575_v21 = vpack.c.bf16 %v74_v18, %v73_v17  ;;  %v75_v23 = vld [vmem:[#allocation4 + $0x30] sm:$0xff]  ;;  %v85_v25 = vld [vmem:[#allocation6 + $0x40] sm:$0xff]  ;;  %vm1413_vm11 = vcmask 1046528  }
  0x3c   :  { %2097 = vmatprep.subr.bf16.mxu1 %v2477_v0  ;;  %v2578_v22 = vpack.c.bf16 %v84_v20, %v83_v19  ;;  %v76_v24 = vld [vmem:[#allocation4 + $0x38] sm:$0xff]  ;;  %v86_v26 = vld [vmem:[#allocation6 + $0x48] sm:$0xff]  ;;  %v87_v29 = vld [vmem:[#allocation6 + $0x50] sm:$0xff] }
  0x3d   :  { %v2583_v27 = vpack.c.bf16 %v76_v24, %v75_v23  ;;  %v2586_v28 = vpack.c.bf16 %v86_v26, %v85_v25  ;;  %v88_v30 = vld [vmem:[#allocation6 + $0x58] sm:$0xff]  ;;  %v89_v33 = vld [vmem:[#allocation6 + $0x60] sm:$0xff]  ;;  %v90_v34 = vld [vmem:[#allocation6 + $0x68] sm:$0xff] }
  0x3e   :  { %2075 = vmatpush3.bf16.msra.mxu0 %v2561_v8  ;;  %v68_v31 = vld [vmem:[#allocation2] sm:$0x1]  ;;  %v2592_v32 = vpack.c.bf16 %v88_v30, %v87_v29  ;;  %v2601_v35 = vpack.c.bf16 %v90_v34, %v89_v33  ;;  %v91_v36 = vld [vmem:[#allocation6 + $0x70] sm:$0xff]  ;;  %v255_v40 = vld [vmem:[#allocation2 + $0x1] sm:$0x1] }
  0x3f   :  { %2076 = vmatprep.subr.bf16.mxu0 %v2477_v0  ;;  %2099 = vmatpush3.bf16.msra.mxu1 %v2567_v15  ;;  %v92_v37 = vld [vmem:[#allocation6 + $0x78] sm:$0xff]  ;;  %vm2662_vm4 = vmand %vm63_vm2, %vm64_vm3 }
  0x40   :  { %2100 = vmatprep.subr.bf16.mxu1 %v2477_v0  ;;  %v2607_v38 = vpack.c.bf16 %v92_v37, %v91_v36  ;;  %v67_v39 = vld [vmem:[%s2980_s1] sm:$0x1]  ;;  %v416_v55 = vld [vmem:[#allocation2 + $0x2] sm:$0x1]  ;;  %v577_v2 = vld [vmem:[#allocation2 + $0x3] sm:$0x1] }
  0x41   :  { %v2660_v45 = vld [vmem:[%s2983_s4] sm:$0x1]  ;;  %v738_v14 = vld [vmem:[#allocation2 + $0x4] sm:$0x1]  ;;  %v899_v29 = vld [vmem:[#allocation2 + $0x5] sm:$0x1] }
  0x42   :  { %2078 = vmatpush3.bf16.msra.mxu0 %v2570_v16 }
  0x43   :  { %2079 = vmatprep.subr.bf16.mxu0 %v2477_v0  ;;  %2102 = vmatpush3.bf16.msra.mxu1 %v2575_v21 }
  0x44   :  { %2103 = vmatprep.subr.bf16.mxu1 %v2477_v0 }
  0x46   :  { %2081 = vmatpush3.bf16.msra.mxu0 %v2578_v22 }
  0x47   :  { %2082 = vmatprep.subr.bf16.mxu0 %v2477_v0  ;;  %2105 = vmatpush3.bf16.msra.mxu1 %v2583_v27 }
  0x48   :  { %2106 = vmatprep.subr.bf16.mxu1 %v2477_v0 }
  0x4a   :  { %2084 = vmatpush3.bf16.msra.mxu0 %v2586_v28  ;;  %1690 = vmatmul.mubr.msk.f32.vlgmr.msra.gmra.mrb[0].mxu1 %vm163_vm1, %v68_v31 }
  0x4b   :  { %2085 = vmatprep.subr.bf16.mxu0 %v2477_v0  ;;  %2108 = vmatpush3.bf16.msra.mxu1 %v2558_v5 }
  0x4c   :  { %1724 = vmatprep.mubr.msk.f32.mxu1 %vm2478_vm0, %v2479_v1  ;;  %2109 = vmatprep.subr.bf16.mxu1 %v2477_v0 }
  0x4e   :  { %2087 = vmatpush3.bf16.msra.mxu0 %v2592_v32 }
  0x4f   :  { %2088 = vmatprep.subr.bf16.mxu0 %v2477_v0  ;;  %2111 = vmatpush3.bf16.msra.mxu1 %v2561_v8 }
  0x50   :  { %2112 = vmatprep.subr.bf16.mxu1 %v2477_v0 }
  0x52   :  { %2090 = vmatpush3.bf16.msra.mxu0 %v2601_v35 }
  0x53   :  { %2091 = vmatprep.subr.bf16.mxu0 %v2477_v0  ;;  %2114 = vmatpush3.bf16.msra.mxu1 %v2570_v16 }
  0x54   :  { %2115 = vmatprep.subr.bf16.mxu1 %v2477_v0 }
  0x56   :  { %2093 = vmatpush3.bf16.msra.mxu0 %v2607_v38 }
  0x57   :  { %2130 = vmatprep.subr.bf16.mxu0 %v2477_v0  ;;  %2117 = vmatpush3.bf16.msra.mxu1 %v2578_v22 }
  0x58   :  { %2118 = vmatprep.subr.bf16.mxu1 %v2477_v0 }
  0x59   :  { %1671 = vmatmul.mubr.f32.vlgmr.msra.gmra.mrb[0].mxu0 %v67_v39 }
  0x5a   :  { %2132 = vmatpush3.bf16.msra.mxu0 %v2564_v12  ;;  %1743 = vmatprep.mubr.msk.f32.mxu0 %vm2478_vm0, %v2479_v1 }
  0x5b   :  { %2133 = vmatprep.subr.bf16.mxu0 %v2477_v0  ;;  %2120 = vmatpush3.bf16.msra.mxu1 %v2586_v28 }
  0x5c   :  { %2121 = vmatprep.subr.bf16.mxu1 %v2477_v0 }
  0x5e   :  { %2135 = vmatpush3.bf16.msra.mxu0 %v2567_v15 }
  0x5f   :  { %2136 = vmatprep.subr.bf16.mxu0 %v2477_v0  ;;  %2123 = vmatpush3.bf16.msra.mxu1 %v2592_v32 }
  0x60   :  { %2124 = vmatprep.subr.bf16.mxu1 %v2477_v0 }
  0x62   :  { %2138 = vmatpush3.bf16.msra.mxu0 %v2575_v21 }
  0x63   :  { %2139 = vmatprep.subr.bf16.mxu0 %v2477_v0  ;;  %2126 = vmatpush3.bf16.msra.mxu1 %v2601_v35 }
  0x64   :  { %2127 = vmatprep.subr.bf16.mxu1 %v2477_v0 }
  0x66   :  { %2141 = vmatpush3.bf16.msra.mxu0 %v2583_v27 }
  0x67   :  { %2142 = vmatprep.subr.bf16.mxu0 %v2477_v0  ;;  %2129 = vmatpush3.bf16.msra.mxu1 %v2607_v38 }
  0x68   :  { %2166 = vmatprep.subr.bf16.mxu1 %v2477_v0 }
  0x69   :  { %1744 = vmatmul.mubr.msk.f32.vlgmr.msra.gmra.mrb[2].mxu0 %vm163_vm1, %v255_v40 }
  0x6a   :  { %2144 = vmatpush3.bf16.msra.mxu0 %v2558_v5  ;;  %1778 = vmatprep.mubr.msk.f32.mxu0 %vm2478_vm0, %v2479_v1 }
  0x6b   :  { %2145 = vmatprep.subr.bf16.mxu0 %v2477_v0 }
  0x6e   :  { %2147 = vmatpush3.bf16.msra.mxu0 %v2561_v8 }
  0x6f   :  { %2148 = vmatprep.subr.bf16.mxu0 %v2477_v0 }
  0x72   :  { %2150 = vmatpush3.bf16.msra.mxu0 %v2570_v16 }
  0x73   :  { %2151 = vmatprep.subr.bf16.mxu0 %v2477_v0 }
  0x76   :  { %2153 = vmatpush3.bf16.msra.mxu0 %v2578_v22 }
  0x77   :  { %2154 = vmatprep.subr.bf16.mxu0 %v2477_v0 }
  0x7a   :  { %2156 = vmatpush3.bf16.msra.mxu0 %v2586_v28 }
  0x7b   :  { %2157 = vmatprep.subr.bf16.mxu0 %v2477_v0 }
  0x7e   :  { %2159 = vmatpush3.bf16.msra.mxu0 %v2592_v32 }
  0x7f   :  { %2160 = vmatprep.subr.bf16.mxu0 %v2477_v0 }
  0x82   :  { %2162 = vmatpush3.bf16.msra.mxu0 %v2601_v35 }
  0x83   :  { %2163 = vmatprep.subr.bf16.mxu0 %v2477_v0 }
  0x86   :  { %2165 = vmatpush3.bf16.msra.mxu0 %v2607_v38 }
  0x87   :  { %2202 = vmatprep.subr.bf16.mxu0 %v2477_v0 }
 0x11d   :  { %v233_v41 = vpop.f32.mrb[0].mxu1 }
 0x11e   :  { %v1691_v42 = vpop.f32.mrb[1].mxu1 }
 0x11f   :  { %v1221_v42 = vld [vmem:[#allocation2 + $0x7] sm:$0x1] }
 0x12c   :  { %v159_v46 = vpop.f32.mrb[0].mxu0 }
 0x12d   :  { %v234_v47 = vadd.f32 %v233_v41, %v159_v46  ;;  %v1672_v48 = vpop.f32.mrb[1].mxu0  ;;  %v1060_v41 = vld [vmem:[#allocation2 + $0x6] sm:$0x1] }
 0x12f   :  { %v2667_v50 = vadd.f32 %v234_v47, %v2660_v45 }
 0x131   :  { %1725 = vmatmul.mubr.f32.vlgmr.msra.gmra.mrb[2].mxu1 %v2667_v50  ;;  %v2673_v51 = vsel %vm2662_vm4, %v2667_v50, -1e+30 }
 0x132   :  { %v240_v52 = vsel %vm239_vm5, %v2673_v51, -inf  ;;  %2168 = vmatpush3.bf16.msra.mxu1 %v2564_v12  ;;  %1797 = vmatprep.mubr.msk.f32.mxu1 %vm2478_vm0, %v2479_v1 }
 0x133   :  { %241 = vmax.xlane.f32.xlu1 %v240_v52  ;;  %2169 = vmatprep.subr.bf16.mxu1 %v2477_v0 }
 0x136   :  { %2171 = vmatpush3.bf16.msra.mxu1 %v2567_v15 }
 0x137   :  { %2172 = vmatprep.subr.bf16.mxu1 %v2477_v0 }
 0x13a   :  { %2174 = vmatpush3.bf16.msra.mxu1 %v2575_v21 }
 0x13b   :  { %2175 = vmatprep.subr.bf16.mxu1 %v2477_v0 }
 0x13c   :  { %v395_v53 = vpop.f32.mrb[2].mxu0 }
 0x13d   :  { %v1745_v54 = vpop.f32.mrb[3].mxu0 }
 0x13e   :  { %2177 = vmatpush3.bf16.msra.mxu1 %v2583_v27 }
 0x13f   :  { %2178 = vmatprep.subr.bf16.mxu1 %v2477_v0 }
 0x141   :  { %1798 = vmatmul.mubr.msk.f32.vlgmr.msra.gmra.mrb[4].mxu1 %vm163_vm1, %v416_v55 }
 0x142   :  { %2180 = vmatpush3.bf16.msra.mxu1 %v2558_v5  ;;  %1832 = vmatprep.mubr.msk.f32.mxu1 %vm2478_vm0, %v2479_v1 }
 0x143   :  { %2181 = vmatprep.subr.bf16.mxu1 %v2477_v0 }
 0x146   :  { %2183 = vmatpush3.bf16.msra.mxu1 %v2561_v8 }
 0x147   :  { %2184 = vmatprep.subr.bf16.mxu1 %v2477_v0 }
 0x14a   :  { %2186 = vmatpush3.bf16.msra.mxu1 %v2570_v16 }
 0x14b   :  { %2187 = vmatprep.subr.bf16.mxu1 %v2477_v0 }
 0x14e   :  { %2189 = vmatpush3.bf16.msra.mxu1 %v2578_v22 }
 0x14f   :  { %2190 = vmatprep.subr.bf16.mxu1 %v2477_v0 }
 0x152   :  { %2192 = vmatpush3.bf16.msra.mxu1 %v2586_v28 }
 0x153   :  { %2193 = vmatprep.subr.bf16.mxu1 %v2477_v0 }
 0x156   :  { %2195 = vmatpush3.bf16.msra.mxu1 %v2592_v32 }
 0x157   :  { %2196 = vmatprep.subr.bf16.mxu1 %v2477_v0 }
 0x15a   :  { %2198 = vmatpush3.bf16.msra.mxu1 %v2601_v35 }
 0x15b   :  { %2199 = vmatprep.subr.bf16.mxu1 %v2477_v0 }
 0x15e   :  { %2201 = vmatpush3.bf16.msra.mxu1 %v2607_v38 }
 0x15f   :  { %2238 = vmatprep.subr.bf16.mxu1 %v2477_v0 }
 0x1c0   :  { %v2890_v43 = vpop.xlane.xlu1 %241 }
 0x204   :  { %v322_v56 = vpop.f32.mrb[2].mxu1 }
 0x205   :  { %v396_v57 = vadd.f32 %v395_v53, %v322_v56  ;;  %v1726_v58 = vpop.f32.mrb[3].mxu1 }
 0x207   :  { %v2707_v59 = vadd.f32 %v396_v57, %v2660_v45 }
 0x209   :  { %1779 = vmatmul.mubr.f32.vlgmr.msra.gmra.mrb[4].mxu0 %v2707_v59  ;;  %v2713_v60 = vsel %vm2662_vm4, %v2707_v59, -1e+30 }
 0x20a   :  { %v401_v61 = vsel %vm239_vm5, %v2713_v60, -inf  ;;  %2204 = vmatpush3.bf16.msra.mxu0 %v2564_v12  ;;  %1851 = vmatprep.mubr.msk.f32.mxu0 %vm2478_vm0, %v2479_v1 }
 0x20b   :  { %402 = vmax.xlane.f32.xlu0 %v401_v61  ;;  %2205 = vmatprep.subr.bf16.mxu0 %v2477_v0 }
 0x20e   :  { %2207 = vmatpush3.bf16.msra.mxu0 %v2567_v15 }
 0x20f   :  { %2208 = vmatprep.subr.bf16.mxu0 %v2477_v0 }
 0x212   :  { %2210 = vmatpush3.bf16.msra.mxu0 %v2575_v21 }
 0x213   :  { %2211 = vmatprep.subr.bf16.mxu0 %v2477_v0 }
 0x214   :  { %v556_v62 = vpop.f32.mrb[4].mxu1 }
 0x215   :  { %v1799_v63 = vpop.f32.mrb[5].mxu1 }
 0x216   :  { %2213 = vmatpush3.bf16.msra.mxu0 %v2583_v27 }
 0x217   :  { %2214 = vmatprep.subr.bf16.mxu0 %v2477_v0 }
 0x219   :  { %1852 = vmatmul.mubr.msk.f32.vlgmr.msra.gmra.mrb[6].mxu0 %vm163_vm1, %v577_v2 }
 0x21a   :  { %2216 = vmatpush3.bf16.msra.mxu0 %v2558_v5  ;;  %1886 = vmatprep.mubr.msk.f32.mxu0 %vm2478_vm0, %v2479_v1 }
 0x21b   :  { %2217 = vmatprep.subr.bf16.mxu0 %v2477_v0 }
 0x21e   :  { %2219 = vmatpush3.bf16.msra.mxu0 %v2561_v8 }
 0x21f   :  { %2220 = vmatprep.subr.bf16.mxu0 %v2477_v0 }
 0x222   :  { %2222 = vmatpush3.bf16.msra.mxu0 %v2570_v16 }
 0x223   :  { %2223 = vmatprep.subr.bf16.mxu0 %v2477_v0 }
 0x226   :  { %2225 = vmatpush3.bf16.msra.mxu0 %v2578_v22 }
 0x227   :  { %2226 = vmatprep.subr.bf16.mxu0 %v2477_v0 }
 0x22a   :  { %2228 = vmatpush3.bf16.msra.mxu0 %v2586_v28 }
 0x22b   :  { %2229 = vmatprep.subr.bf16.mxu0 %v2477_v0 }
 0x22e   :  { %2231 = vmatpush3.bf16.msra.mxu0 %v2592_v32 }
 0x22f   :  { %2232 = vmatprep.subr.bf16.mxu0 %v2477_v0 }
 0x232   :  { %2234 = vmatpush3.bf16.msra.mxu0 %v2601_v35 }
 0x233   :  { %2235 = vmatprep.subr.bf16.mxu0 %v2477_v0 }
 0x236   :  { %2237 = vmatpush3.bf16.msra.mxu0 %v2607_v38 }
 0x237   :  { %2274 = vmatprep.subr.bf16.mxu0 %v2477_v0 }
 0x2dc   :  { %v483_v3 = vpop.f32.mrb[4].mxu0 }
 0x2dd   :  { %v557_v4 = vadd.f32 %v556_v62, %v483_v3  ;;  %v1780_v6 = vpop.f32.mrb[5].mxu0 }
 0x2df   :  { %v2747_v7 = vadd.f32 %v557_v4, %v2660_v45 }
 0x2e1   :  { %1833 = vmatmul.mubr.f32.vlgmr.msra.gmra.mrb[6].mxu1 %v2747_v7  ;;  %v2753_v9 = vsel %vm2662_vm4, %v2747_v7, -1e+30 }
 0x2e2   :  { %v562_v10 = vsel %vm239_vm5, %v2753_v9, -inf  ;;  %2240 = vmatpush3.bf16.msra.mxu1 %v2564_v12  ;;  %1905 = vmatprep.mubr.msk.f32.mxu1 %vm2478_vm0, %v2479_v1 }
 0x2e3   :  { %563 = vmax.xlane.f32.xlu0 %v562_v10  ;;  %2241 = vmatprep.subr.bf16.mxu1 %v2477_v0 }
 0x2e6   :  { %2243 = vmatpush3.bf16.msra.mxu1 %v2567_v15 }
 0x2e7   :  { %2244 = vmatprep.subr.bf16.mxu1 %v2477_v0 }
 0x2ea   :  { %2246 = vmatpush3.bf16.msra.mxu1 %v2575_v21 }
 0x2eb   :  { %2247 = vmatprep.subr.bf16.mxu1 %v2477_v0 }
 0x2ec   :  { %v717_v11 = vpop.f32.mrb[6].mxu0 }
 0x2ed   :  { %v1853_v13 = vpop.f32.mrb[7].mxu0 }
 0x2ee   :  { %2249 = vmatpush3.bf16.msra.mxu1 %v2583_v27 }
 0x2ef   :  { %2250 = vmatprep.subr.bf16.mxu1 %v2477_v0 }
 0x2f1   :  { %1906 = vmatmul.mubr.msk.f32.vlgmr.msra.gmra.mrb[8].mxu1 %vm163_vm1, %v738_v14 }
 0x2f2   :  { %2252 = vmatpush3.bf16.msra.mxu1 %v2558_v5  ;;  %1940 = vmatprep.mubr.msk.f32.mxu1 %vm2478_vm0, %v2479_v1 }
 0x2f3   :  { %2253 = vmatprep.subr.bf16.mxu1 %v2477_v0 }
 0x2f6   :  { %2255 = vmatpush3.bf16.msra.mxu1 %v2561_v8 }
 0x2f7   :  { %2256 = vmatprep.subr.bf16.mxu1 %v2477_v0 }
 0x2fa   :  { %2258 = vmatpush3.bf16.msra.mxu1 %v2570_v16 }
 0x2fb   :  { %2259 = vmatprep.subr.bf16.mxu1 %v2477_v0 }
 0x2fe   :  { %2261 = vmatpush3.bf16.msra.mxu1 %v2578_v22 }
 0x2ff   :  { %2262 = vmatprep.subr.bf16.mxu1 %v2477_v0 }
 0x302   :  { %2264 = vmatpush3.bf16.msra.mxu1 %v2586_v28 }
 0x303   :  { %2265 = vmatprep.subr.bf16.mxu1 %v2477_v0 }
 0x306   :  { %2267 = vmatpush3.bf16.msra.mxu1 %v2592_v32 }
 0x307   :  { %2268 = vmatprep.subr.bf16.mxu1 %v2477_v0 }
 0x30a   :  { %2270 = vmatpush3.bf16.msra.mxu1 %v2601_v35 }
 0x30b   :  { %2271 = vmatprep.subr.bf16.mxu1 %v2477_v0 }
 0x30e   :  { %2273 = vmatpush3.bf16.msra.mxu1 %v2607_v38 }
 0x30f   :  { %2310 = vmatprep.subr.bf16.mxu1 %v2477_v0 }
 0x3b4   :  { %v644_v17 = vpop.f32.mrb[6].mxu1 }
 0x3b5   :  { %v718_v18 = vadd.f32 %v717_v11, %v644_v17  ;;  %v1834_v19 = vpop.f32.mrb[7].mxu1 }
 0x3b7   :  { %v2787_v20 = vadd.f32 %v718_v18, %v2660_v45 }
 0x3b9   :  { %1887 = vmatmul.mubr.f32.vlgmr.msra.gmra.mrb[8].mxu0 %v2787_v20  ;;  %v2793_v23 = vsel %vm2662_vm4, %v2787_v20, -1e+30 }
 0x3ba   :  { %v723_v24 = vsel %vm239_vm5, %v2793_v23, -inf  ;;  %2276 = vmatpush3.bf16.msra.mxu0 %v2564_v12  ;;  %1959 = vmatprep.mubr.msk.f32.mxu0 %vm2478_vm0, %v2479_v1 }
 0x3bb   :  { %724 = vmax.xlane.f32.xlu1 %v723_v24  ;;  %2277 = vmatprep.subr.bf16.mxu0 %v2477_v0 }
 0x3be   :  { %2279 = vmatpush3.bf16.msra.mxu0 %v2567_v15 }
 0x3bf   :  { %2280 = vmatprep.subr.bf16.mxu0 %v2477_v0 }
 0x3c2   :  { %2282 = vmatpush3.bf16.msra.mxu0 %v2575_v21 }
 0x3c3   :  { %2283 = vmatprep.subr.bf16.mxu0 %v2477_v0 }
 0x3c4   :  { %v878_v25 = vpop.f32.mrb[8].mxu1 }
 0x3c5   :  { %v1907_v26 = vpop.f32.mrb[9].mxu1 }
 0x3c6   :  { %2285 = vmatpush3.bf16.msra.mxu0 %v2583_v27 }
 0x3c7   :  { %2286 = vmatprep.subr.bf16.mxu0 %v2477_v0 }
 0x3c9   :  { %1960 = vmatmul.mubr.msk.f32.vlgmr.msra.gmra.mrb[10].mxu0 %vm163_vm1, %v899_v29 }
 0x3ca   :  { %2288 = vmatpush3.bf16.msra.mxu0 %v2558_v5  ;;  %1994 = vmatprep.mubr.msk.f32.mxu0 %vm2478_vm0, %v2479_v1 }
 0x3cb   :  { %2289 = vmatprep.subr.bf16.mxu0 %v2477_v0 }
 0x3ce   :  { %2291 = vmatpush3.bf16.msra.mxu0 %v2561_v8 }
 0x3cf   :  { %2292 = vmatprep.subr.bf16.mxu0 %v2477_v0 }
 0x3d2   :  { %2294 = vmatpush3.bf16.msra.mxu0 %v2570_v16 }
 0x3d3   :  { %2295 = vmatprep.subr.bf16.mxu0 %v2477_v0 }
 0x3d6   :  { %2297 = vmatpush3.bf16.msra.mxu0 %v2578_v22 }
 0x3d7   :  { %2298 = vmatprep.subr.bf16.mxu0 %v2477_v0 }
 0x3da   :  { %2300 = vmatpush3.bf16.msra.mxu0 %v2586_v28 }
 0x3db   :  { %2301 = vmatprep.subr.bf16.mxu0 %v2477_v0 }
 0x3de   :  { %2303 = vmatpush3.bf16.msra.mxu0 %v2592_v32 }
 0x3df   :  { %2304 = vmatprep.subr.bf16.mxu0 %v2477_v0 }
 0x3e2   :  { %2306 = vmatpush3.bf16.msra.mxu0 %v2601_v35 }
 0x3e3   :  { %2307 = vmatprep.subr.bf16.mxu0 %v2477_v0 }
 0x3e6   :  { %2309 = vmatpush3.bf16.msra.mxu0 %v2607_v38 }
 0x3e7   :  { %2346 = vmatprep.subr.bf16.mxu0 %v2477_v0 }
 0x448   :  { %v725_v14 = vpop.xlane.xlu1 %724 }
 0x449   :  { %v726_v18 = vsub.f32 %v2793_v23, %v725_v14 }
 0x44b   :  { %v727_v24 = vmul.f32 1.442695, %v726_v18 }
 0x48c   :  { %v805_v30 = vpop.f32.mrb[8].mxu0 }
 0x48d   :  { %v879_v31 = vadd.f32 %v878_v25, %v805_v30  ;;  %v1888_v33 = vpop.f32.mrb[9].mxu0 }
 0x48f   :  { %v2827_v34 = vadd.f32 %v879_v31, %v2660_v45 }
 0x491   :  { %1941 = vmatmul.mubr.f32.vlgmr.msra.gmra.mrb[10].mxu1 %v2827_v34  ;;  %v2833_v36 = vsel %vm2662_vm4, %v2827_v34, -1e+30 }
 0x492   :  { %v884_v37 = vsel %vm239_vm5, %v2833_v36, -inf  ;;  %2312 = vmatpush3.bf16.msra.mxu1 %v2564_v12  ;;  %2013 = vmatprep.mubr.msk.f32.mxu1 %vm2478_vm0, %v2479_v1 }
 0x493   :  { %885 = vmax.xlane.f32.xlu0 %v884_v37  ;;  %2313 = vmatprep.subr.bf16.mxu1 %v2477_v0 }
 0x496   :  { %2315 = vmatpush3.bf16.msra.mxu1 %v2567_v15 }
 0x497   :  { %2316 = vmatprep.subr.bf16.mxu1 %v2477_v0 }
 0x49a   :  { %2318 = vmatpush3.bf16.msra.mxu1 %v2575_v21 }
 0x49b   :  { %2319 = vmatprep.subr.bf16.mxu1 %v2477_v0 }
 0x49c   :  { %v1039_v39 = vpop.f32.mrb[10].mxu0 }
 0x49d   :  { %v1961_v40 = vpop.f32.mrb[11].mxu0 }
 0x49e   :  { %2321 = vmatpush3.bf16.msra.mxu1 %v2583_v27 }
 0x49f   :  { %2322 = vmatprep.subr.bf16.mxu1 %v2477_v0 }
 0x4a1   :  { %2014 = vmatmul.mubr.msk.f32.vlgmr.msra.gmra.mrb[12].mxu1 %vm163_vm1, %v1060_v41 }
 0x4a2   :  { %2324 = vmatpush3.bf16.msra.mxu1 %v2558_v5  ;;  %2048 = vmatprep.mubr.msk.f32.mxu1 %vm2478_vm0, %v2479_v1 }
 0x4a3   :  { %2325 = vmatprep.subr.bf16.mxu1 %v2477_v0 }
 0x4a6   :  { %2327 = vmatpush3.bf16.msra.mxu1 %v2561_v8 }
 0x4a7   :  { %2328 = vmatprep.subr.bf16.mxu1 %v2477_v0 }
 0x4aa   :  { %2330 = vmatpush3.bf16.msra.mxu1 %v2570_v16 }
 0x4ab   :  { %2331 = vmatprep.subr.bf16.mxu1 %v2477_v0 }
 0x4ae   :  { %2333 = vmatpush3.bf16.msra.mxu1 %v2578_v22 }
 0x4af   :  { %2334 = vmatprep.subr.bf16.mxu1 %v2477_v0 }
 0x4b2   :  { %2336 = vmatpush3.bf16.msra.mxu1 %v2586_v28 }
 0x4b3   :  { %2337 = vmatprep.subr.bf16.mxu1 %v2477_v0 }
 0x4b6   :  { %2339 = vmatpush3.bf16.msra.mxu1 %v2592_v32 }
 0x4b7   :  { %2340 = vmatprep.subr.bf16.mxu1 %v2477_v0 }
 0x4ba   :  { %2342 = vmatpush3.bf16.msra.mxu1 %v2601_v35 }
 0x4bb   :  { %2343 = vmatprep.subr.bf16.mxu1 %v2477_v0 }
 0x4be   :  { %2345 = vmatpush3.bf16.msra.mxu1 %v2607_v38 }
 0x564   :  { %v966_v5 = vpop.f32.mrb[10].mxu1 }
 0x565   :  { %v1040_v8 = vadd.f32 %v1039_v39, %v966_v5  ;;  %v1942_v16 = vpop.f32.mrb[11].mxu1 }
 0x567   :  { %v2866_v22 = vadd.f32 %v1040_v8, %v2660_v45 }
 0x569   :  { %1995 = vmatmul.mubr.f32.vlgmr.msra.gmra.mrb[12].mxu0 %v2866_v22  ;;  %v2872_v28 = vsel %vm2662_vm4, %v2866_v22, -1e+30 }
 0x56a   :  { %v1045_v32 = vsel %vm239_vm5, %v2872_v28, -inf  ;;  %2348 = vmatpush3.bf16.msra.mxu0 %v2564_v12  ;;  %2067 = vmatprep.mubr.msk.f32.mxu0 %vm2478_vm0, %v2479_v1  ;;  %v2886_v12 = vpop.xlane.xlu0 %402 }
 0x56b   :  { %1046 = vmax.xlane.f32.xlu1 %v1045_v32  ;;  %2349 = vmatprep.subr.bf16.mxu0 %v2477_v0  ;;  %v404_v1 = vsub.f32 %v2713_v60, %v2886_v12 }
 0x56e   :  { %2351 = vmatpush3.bf16.msra.mxu0 %v2567_v15  ;;  %v2892_v15 = vpop.xlane.xlu0 %563 }
 0x56f   :  { %2352 = vmatprep.subr.bf16.mxu0 %v2477_v0  ;;  %v565_v13 = vsub.f32 %v2753_v9, %v2892_v15 }
 0x571   :  { %v566_v17 = vmul.f32 1.442695, %v565_v13 }
 0x572   :  { %2354 = vmatpush3.bf16.msra.mxu0 %v2575_v21  ;;  %v243_v21 = vsub.f32 %v2673_v51, %v2890_v43  ;;  %v2896_v44 = vpop.xlane.xlu0 %885 }
 0x573   :  { %2355 = vmatprep.subr.bf16.mxu0 %v2477_v0  ;;  %v405_v0 = vmul.f32 1.442695, %v404_v1  ;;  %v887_v46 = vsub.f32 %v2833_v36, %v2896_v44 }
 0x574   :  { %v1200_v35 = vpop.f32.mrb[12].mxu1 }
 0x575   :  { %v2015_v38 = vpop.f32.mrb[13].mxu1  ;;  %2368 = vpow2.f32 %v405_v0  ;;  %v888_v48 = vmul.f32 1.442695, %v887_v46 }
 0x576   :  { %2357 = vmatpush3.bf16.msra.mxu0 %v2583_v27  ;;  %v244_v27 = vmul.f32 1.442695, %v243_v21 }
 0x578   :  { %2370 = vpow2.f32 %v244_v27 }
 0x579   :  { %2068 = vmatmul.mubr.msk.f32.vlgmr.msra.gmra.mrb[14].mxu0 %vm163_vm1, %v1221_v42  ;;  %2372 = vpow2.f32 %v888_v48 }
 0x57f   :  { %v2369_v56 = vpop.eup %2368 }
 0x580   :  { %v407_v57 = vsel %vm239_vm5, %v2369_v56, 0.0 }
 0x582   :  { %v2371_v58 = vpop.eup %2370 }
 0x583   :  { %v246_v60 = vsel %vm239_vm5, %v2371_v58, 0.0  ;;  %v2373_v61 = vpop.eup %2372 }
 0x584   :  { %v890_v62 = vsel %vm239_vm5, %v2373_v61, 0.0 }
 0x5f8   :  { %v2918_v19 = vpop.xlane.xlu1 %1046 }
 0x5f9   :  { %v1048_v25 = vsub.f32 %v2872_v28, %v2918_v19 }
 0x5fb   :  { %v1049_v29 = vmul.f32 1.442695, %v1048_v25 }
 0x63c   :  { %v1127_v47 = vpop.f32.mrb[12].mxu0 }
 0x63d   :  { %v1201_v52 = vadd.f32 %v1200_v35, %v1127_v47  ;;  %v1996_v53 = vpop.f32.mrb[13].mxu0 }
 0x63f   :  { %v2901_v54 = vadd.f32 %v1201_v52, %v2660_v45 }
 0x641   :  { %2049 = vmatmul.mubr.f32.vlgmr.msra.gmra.mrb[14].mxu1 %v2901_v54  ;;  %v1205_v51 = vsel %vm2662_vm4, %v2901_v54, -1e+30 }
 0x642   :  { %v1206_v55 = vsel %vm239_vm5, %v1205_v51, -inf }
 0x643   :  { %1207 = vmax.xlane.f32.xlu0 %v1206_v55 }
 0x647   :  { %408 = vadd.xlane.f32.xlu0 %v407_v57 }
 0x64b   :  { %247 = vadd.xlane.f32.xlu0 %v246_v60 }
 0x64c   :  { %v1361_v63 = vpop.f32.mrb[14].mxu0 }
 0x64d   :  { %v2069_v2 = vpop.f32.mrb[15].mxu0 }
 0x64f   :  { %891 = vadd.xlane.f32.xlu0 %v890_v62 }
 0x6d0   :  { %v2911_v3 = vpop.xlane.xlu0 %1207 }
 0x6d1   :  { %v1209_v4 = vsub.f32 %v1205_v51, %v2911_v3 }
 0x6d3   :  { %v1210_v6 = vmul.f32 1.442695, %v1209_v4 }
 0x6d4   :  { %v409_v38 = vpop.xlane.xlu0 %408 }
 0x6d5   :  { %2374 = vpow2.f32 %v1210_v6 }
 0x6d6   :  { %2376 = vpow2.f32 %v566_v17 }
 0x6d7   :  { %2378 = vpow2.f32 %v727_v24 }
 0x6d8   :  { %2380 = vpow2.f32 %v1049_v29  ;;  %v248_v1 = vpop.xlane.xlu0 %247 }
 0x6dc   :  { %v892_v0 = vpop.xlane.xlu0 %891 }
 0x6df   :  { %v2375_v10 = vpop.eup %2374 }
 0x6e0   :  { %v1212_v11 = vsel %vm239_vm5, %v2375_v10, 0.0  ;;  %v2377_v36 = vpop.eup %2376 }
 0x6e1   :  { %1213 = vadd.xlane.f32.xlu0 %v1212_v11  ;;  %v568_v37 = vsel %vm239_vm5, %v2377_v36, 0.0  ;;  %v2379_v39 = vpop.eup %2378 }
 0x6e2   :  { %v729_v40 = vsel %vm239_vm5, %v2379_v39, 0.0  ;;  %v2381_v41 = vpop.eup %2380 }
 0x714   :  { %v1288_v26 = vpop.f32.mrb[14].mxu1 }
 0x715   :  { %v1362_v30 = vadd.f32 %v1361_v63, %v1288_v26  ;;  %v2050_v31 = vpop.f32.mrb[15].mxu1 }
 0x717   :  { %v2923_v33 = vadd.f32 %v1362_v30, %v2660_v45  ;;  %v1051_v45 = vsel %vm239_vm5, %v2381_v41, 0.0 }
 0x719   :  { %v1366_v9 = vsel %vm2662_vm4, %v2923_v33, -1e+30 }
 0x71a   :  { %v1367_v23 = vsel %vm239_vm5, %v1366_v9, -inf }
 0x71b   :  { %1368 = vmax.xlane.f32.xlu1 %v1367_v23 }
 0x71f   :  { %569 = vadd.xlane.f32.xlu1 %v568_v37 }
 0x723   :  { %730 = vadd.xlane.f32.xlu1 %v729_v40 }
 0x727   :  { %1052 = vadd.xlane.f32.xlu1 %v1051_v45 }
 0x76e   :  { %v1214_v27 = vpop.xlane.xlu0 %1213 }
 0x7a8   :  { %v2932_v5 = vpop.xlane.xlu1 %1368 }
 0x7a9   :  { %v1370_v8 = vsub.f32 %v1366_v9, %v2932_v5 }
 0x7ab   :  { %v1371_v16 = vmul.f32 1.442695, %v1370_v8 }
 0x7ac   :  { %v570_v35 = vpop.xlane.xlu1 %569 }
 0x7ad   :  { %2382 = vpow2.f32 %v1371_v16 }
 0x7ae   :  { %2384 = vlog2.f32 %v409_v38 }
 0x7af   :  { %2386 = vlog2.f32 %v570_v35 }
 0x7b0   :  { %v731_v42 = vpop.xlane.xlu1 %730 }
 0x7b1   :  { %2388 = vlog2.f32 %v731_v42 }
 0x7b2   :  { %2390 = vlog2.f32 %v248_v1 }
 0x7b4   :  { %v1053_v21 = vpop.xlane.xlu1 %1052 }
 0x7b5   :  { %2392 = vlog2.f32 %v1053_v21 }
 0x7b6   :  { %2394 = vlog2.f32 %v892_v0 }
 0x7b7   :  { %v2383_v28 = vpop.eup %2382  ;;  %2396 = vlog2.f32 %v1214_v27 }
 0x7b8   :  { %v1373_v32 = vsel %vm239_vm5, %v2383_v28, 0.0  ;;  %v2385_v46 = vpop.eup %2384 }
 0x7b9   :  { %1374 = vadd.xlane.f32.xlu1 %v1373_v32  ;;  %v2387_v47 = vpop.eup %2386  ;;  %v411_v51 = vmul.f32 0.6931472, %v2385_v46 }
 0x7ba   :  { %v572_v53 = vmul.f32 0.6931472, %v2387_v47 }
 0x7bb   :  { %v2389_v48 = vpop.eup %2388  ;;  %v412_v61 = vadd.f32 %v411_v51, %v2886_v12 }
 0x7bc   :  { %v2391_v52 = vpop.eup %2390  ;;  %v733_v55 = vmul.f32 0.6931472, %v2389_v48  ;;  %v573_v60 = vadd.f32 %v572_v53, %v2892_v15 }
 0x7bd   :  { %v250_v58 = vmul.f32 0.6931472, %v2391_v52  ;;  %v413_v13 = vsub.f32 %v2707_v59, %v412_v61 }
 0x7be   :  { %v734_v62 = vadd.f32 %v733_v55, %v725_v14  ;;  %v574_v11 = vsub.f32 %v2747_v7, %v573_v60 }
 0x7bf   :  { %v2393_v56 = vpop.eup %2392  ;;  %v251_v6 = vadd.f32 %v250_v58, %v2890_v43  ;;  %v414_v43 = vsel %vm2662_vm4, %v413_v13, %v2707_v59 }
 0x7c0   :  { %v2395_v57 = vpop.eup %2394  ;;  %v1055_v63 = vmul.f32 0.6931472, %v2393_v56  ;;  %v735_v17 = vsub.f32 %v2787_v20, %v734_v62  ;;  %v575_v14 = vsel %vm2662_vm4, %v574_v11, %v2747_v7  ;;  %v1382_v7 = vrot.slane %v414_v43, 7 }
 0x7c1   :  { %v894_v2 = vmul.f32 0.6931472, %v2395_v57  ;;  %v2397_v4 = vpop.eup %2396  ;;  %v252_v12 = vsub.f32 %v2667_v50, %v251_v6  ;;  %v1385_v30 = vrot.slane %v575_v14, 6 }
 0x7c2   :  { %v1056_v18 = vadd.f32 %v1055_v63, %v2918_v19  ;;  %v1216_v24 = vmul.f32 0.6931472, %v2397_v4  ;;  %v736_v25 = vsel %vm2662_vm4, %v735_v17, %v2787_v20 }
 0x7c3   :  { %v895_v15 = vadd.f32 %v894_v2, %v2896_v44  ;;  %v253_v29 = vsel %vm2662_vm4, %v252_v12, %v2667_v50  ;;  %v1388_v31 = vrot.slane %v736_v25, 5 }
 0x7c4   :  { %v1057_v26 = vsub.f32 %v2866_v22, %v1056_v18  ;;  %v1217_v44 = vadd.f32 %v1216_v24, %v2911_v3  ;;  %v1402_v9 = vsel %vm239_vm5, %v253_v29, %v1382_v7 }
 0x7c5   :  { %v896_v19 = vsub.f32 %v2827_v34, %v895_v15  ;;  %v1404_v36 = vsel %vm1403_vm6, %v1402_v9, %v1385_v30 }
 0x7c6   :  { %v1058_v59 = vsel %vm2662_vm4, %v1057_v26, %v2866_v22  ;;  %v1218_v23 = vsub.f32 %v2901_v54, %v1217_v44  ;;  %v1406_v37 = vsel %vm1405_vm7, %v1404_v36, %v1388_v31 }
 0x7c7   :  { %v897_v3 = vsel %vm2662_vm4, %v896_v19, %v2827_v34  ;;  %v1394_v39 = vrot.slane %v1058_v59, 3 }
 0x7c8   :  { %v1391_v40 = vrot.slane %v897_v3, 4  ;;  %v1219_v22 = vsel %vm2662_vm4, %v1218_v23, %v2901_v54 }
 0x7c9   :  { %v1397_v34 = vrot.slane %v1219_v22, 2 }
 0x7ca   :  { %v1408_v45 = vsel %vm1407_vm8, %v1406_v37, %v1391_v40 }
 0x7cb   :  { %v1410_v16 = vsel %vm1409_vm9, %v1408_v45, %v1394_v39 }
 0x7cc   :  { %v1412_v35 = vsel %vm1411_vm10, %v1410_v16, %v1397_v34 }
 0x846   :  { %v1375_v10 = vpop.xlane.xlu1 %1374 }
 0x847   :  { %2398 = vlog2.f32 %v1375_v10 }
 0x851   :  { %v2399_v20 = vpop.eup %2398 }
 0x852   :  { %v1377_v50 = vmul.f32 0.6931472, %v2399_v20 }
 0x854   :  { %v1378_v41 = vadd.f32 %v1377_v50, %v2932_v5 }
 0x856   :  { %v1379_v8 = vsub.f32 %v2923_v33, %v1378_v41 }
 0x858   :  { %v1380_v28 = vsel %vm2662_vm4, %v1379_v8, %v2923_v33 }
 0x859   :  { %v1400_v32 = vrot.slane %v1380_v28, 1 }
 0x85b   :  { %v1414_v38 = vsel %vm1413_vm11, %v1412_v35, %v1400_v32 }
 0x85c   :  { %1415 = vst [vmem:[%s2984_s5] sm:$0xff] %v1414_v38 }
 0x85d   :  { %1420 = vsyncpa [#allocation3], 1 }
 0x85e   :  { %1421 = vsyncpa [#allocation5], 1 }

</bundles_post_ra>
